<compile_context>
chip_gen: v7x
topology: tpu7x:2x2x1
jax: 0.10.0
libtpu: 0.0.40
codegen_flags: <defaults>
</compile_context>

<pallas_src>
import jax
import jax.numpy as jnp
from jax.experimental import pallas as pl
from jax.experimental.pallas import tpu as pltpu


# ------------------------------------------------------------------- kernel
def _channel_attention_kernel(x_ref, w1t_ref, w2t_ref, o_ref):
    # x_ref block: (Bt, C, L) in the caller's dtype; channels on sublanes,
    # length on lanes.
    xf = x_ref[...].astype(jnp.float32)              # compute in f32 in-regs
    Bt, C, L = xf.shape

    # Global pooling over the lane axis (XLU reductions), all Bt rows at once.
    avg = jnp.sum(xf, axis=2) * (1.0 / float(L))      # (Bt, C)
    mx = jnp.max(xf, axis=2)                          # (Bt, C)

    # Pack both pooled branches for every batch element into ONE operand so
    # the shared MLP is a single pair of matmuls per grid step.
    pooled = jnp.concatenate([avg, mx], axis=0)       # (2*Bt, C)

    # Shared MLP: Linear(C->H, no bias) -> ReLU -> Linear(H->C, no bias).
    # Weights are pre-transposed in the wrapper: w1t = W1.T (C,H), w2t = W2.T (H,C).
    h = jnp.maximum(
        jnp.dot(pooled, w1t_ref[...], preferred_element_type=jnp.float32), 0.0
    )                                                 # (2*Bt, H)
    y = jnp.dot(h, w2t_ref[...], preferred_element_type=jnp.float32)  # (2*Bt, C)

    logits = y[:Bt] + y[Bt:]                          # avg_out + max_out (Bt, C)
    attn = jax.nn.sigmoid(logits)                     # (Bt, C) f32

    # Gate: broadcast per-channel attention over L; store in the input dtype.
    o_ref[...] = (xf * attn[:, :, None]).astype(o_ref.dtype)


# --------------------------------------------------------------- tile sizing
def _choose_batch_tile(B, C, L, itemsize):
    bytes_per_b = max(C * L * itemsize, 1)
    target_bytes = 1 << 20            # ~1 MiB of x per grid step
    vmem_cap = 48 << 20               # in+out double-buffered must fit (v7x)
    bt = max(1, min(B, target_bytes // bytes_per_b))
    while bt > 1 and 4 * bt * bytes_per_b > vmem_cap:
        bt -= 1
    # Prefer a tile that divides B so no grid step reads/writes padding.
    while bt > 1 and B % bt != 0:
        bt -= 1
    return int(bt)


# ------------------------------------------------------------------ wrapper
def channel_attention(x, w1, w2):
    """x: (B, C, L); w1: (H, C) fc1 weight; w2: (C, H) fc2 weight -> (B, C, L).

    Output dtype == input dtype; MLP / pooling math is done in f32 in-register.
    """
    B, C, L = x.shape
    H = w1.shape[0]

    # Pre-transpose the tiny MLP weights once (PyTorch Linear stores (out,in))
    # so the kernel contracts on the last axis with no in-kernel transpose.
    w1t = jnp.asarray(w1, jnp.float32).T              # (C, H)
    w2t = jnp.asarray(w2, jnp.float32).T              # (H, C)

    itemsize = jnp.dtype(x.dtype).itemsize
    bt = _choose_batch_tile(B, C, L, itemsize)
    nb = pl.cdiv(B, bt)

    block_bytes = bt * C * L * itemsize
    weight_bytes = (w1t.size + w2t.size) * 4
    # in + out blocks, each double-buffered, plus weights and headroom.
    vmem_bytes = int(min(100 << 20,
                         max(32 << 20, 4 * block_bytes + 2 * weight_bytes + (8 << 20))))

    return pl.pallas_call(
        _channel_attention_kernel,
        out_shape=jax.ShapeDtypeStruct((B, C, L), x.dtype),
        grid=(nb,),
        in_specs=[
            pl.BlockSpec((bt, C, L), lambda b: (b, 0, 0)),   # x batch tile
            pl.BlockSpec((C, H), lambda b: (0, 0)),          # fc1 weight (transposed)
            pl.BlockSpec((H, C), lambda b: (0, 0)),          # fc2 weight (transposed)
        ],
        out_specs=pl.BlockSpec((bt, C, L), lambda b: (b, 0, 0)),
        compiler_params=pltpu.CompilerParams(
            dimension_semantics=("parallel",),               # megacore / v7x TC split
            vmem_limit_bytes=vmem_bytes,
        ),
    )(x, w1t, w2t)


# ---------------------------------------------------------------- reference
def _reference(x, w1, w2):
    avg = jnp.mean(x, axis=2)                         # (B, C)
    mx = jnp.max(x, axis=2)                           # (B, C)

    def fc(v):
        return jnp.maximum(v @ w1.T, 0.0) @ w2.T

    attn = jax.nn.sigmoid(fc(avg) + fc(mx))           # (B, C)
    return x * attn[:, :, None]


# --------------------------------------------------------------------- main
if __name__ == "__main__":
    B, C, L, reduction = 2, 32, 16, 16
    H = C // reduction                                # = 2

    key = jax.random.PRNGKey(0)
    kx, k1, k2 = jax.random.split(key, 3)
    x = jax.random.normal(kx, (B, C, L), jnp.float32)
    w1 = jax.random.normal(k1, (H, C), jnp.float32) * (1.0 / jnp.sqrt(C))
    w2 = jax.random.normal(k2, (C, H), jnp.float32) * (1.0 / jnp.sqrt(H))

    # f32 path
    out = jax.block_until_ready(channel_attention(x, w1, w2))
    ref = jax.block_until_ready(_reference(x, w1, w2))
    assert out.shape == (B, C, L) and out.dtype == x.dtype, (out.shape, out.dtype)
    assert jnp.allclose(out, ref, atol=1e-4, rtol=1e-4), \
        float(jnp.max(jnp.abs(out - ref)))

    # bf16 path: x / output stay bf16 (halved HBM traffic), math in f32.
    xb = x.astype(jnp.bfloat16)
    outb = jax.block_until_ready(channel_attention(xb, w1, w2))
    refb = _reference(xb.astype(jnp.float32), w1, w2)
    assert outb.dtype == jnp.bfloat16
    assert jnp.allclose(outb.astype(jnp.float32), refb, atol=3e-2, rtol=3e-2), \
        float(jnp.max(jnp.abs(outb.astype(jnp.float32) - refb)))

    print("KERNEL_OK")
</pallas_src>

<mosaic_0001>
module attributes {stable_mosaic.version = 11 : i64} {
  func.func @_channel_attention_kernel(%arg0: i32, %arg1: memref<2x32x16xf32, #tpu.memory_space<vmem>>, %arg2: memref<32x2xf32, #tpu.memory_space<vmem>>, %arg3: memref<2x32xf32, #tpu.memory_space<vmem>>, %arg4: memref<2x32x16xf32, #tpu.memory_space<vmem>>) attributes {dimension_semantics = [#tpu.dimension_semantics<parallel>], iteration_bounds = array<i64: 1>, scalar_prefetch = 0 : i64, scratch_operands = 0 : i64, tpu.core_type = #tpu.core_type<tc>, window_params = [{transform_indices = @transform_0, window_bounds = array<i64: 2, 32, 16>}, {pipeline_mode = #tpu.pipeline_mode<synchronous>, transform_indices = @transform_1, window_bounds = array<i64: 32, 2>}, {pipeline_mode = #tpu.pipeline_mode<synchronous>, transform_indices = @transform_2, window_bounds = array<i64: 2, 32>}, {transform_indices = @transform_3, window_bounds = array<i64: 2, 32, 16>}]} {
    %c0 = arith.constant 0 : index
    %c0_0 = arith.constant 0 : index
    %c0_1 = arith.constant 0 : index
    %0 = vector.load %arg1[%c0, %c0_0, %c0_1] : memref<2x32x16xf32, #tpu.memory_space<vmem>>, vector<2x32x16xf32>
    %cst = arith.constant dense<0.000000e+00> : vector<2x32xf32>
    %1 = vector.multi_reduction <add>, %0, %cst [2] : vector<2x32x16xf32> to vector<2x32xf32>
    %cst_2 = arith.constant 6.250000e-02 : f32
    %2 = vector.broadcast %cst_2 : f32 to vector<2x32xf32>
    %3 = arith.mulf %1, %2 : vector<2x32xf32>
    %cst_3 = arith.constant dense<0xFF800000> : vector<2x32xf32>
    %4 = vector.multi_reduction <maximumf>, %0, %cst_3 [2] : vector<2x32x16xf32> to vector<2x32xf32>
    %5 = tpu.concatenate %3, %4 in 0 : vector<2x32xf32>, vector<2x32xf32> -> vector<4x32xf32>
    %c0_4 = arith.constant 0 : index
    %c0_5 = arith.constant 0 : index
    %6 = vector.load %arg2[%c0_4, %c0_5] : memref<32x2xf32, #tpu.memory_space<vmem>>, vector<32x2xf32>
    %cst_6 = arith.constant dense<0.000000e+00> : vector<4x2xf32>
    %7 = tpu.matmul %5, %6, %cst_6 {dimension_numbers = #tpu.dot_dimension_numbers<[1], [0], [0], [1], [0, 0, 1, 1], [], []>} : vector<4x32xf32>, vector<32x2xf32>, vector<4x2xf32> -> vector<4x2xf32>
    %cst_7 = arith.constant 0.000000e+00 : f32
    %8 = vector.broadcast %cst_7 : f32 to vector<4x2xf32>
    %9 = arith.maximumf %7, %8 : vector<4x2xf32>
    %c0_8 = arith.constant 0 : index
    %c0_9 = arith.constant 0 : index
    %10 = vector.load %arg3[%c0_8, %c0_9] : memref<2x32xf32, #tpu.memory_space<vmem>>, vector<2x32xf32>
    %cst_10 = arith.constant dense<0.000000e+00> : vector<4x32xf32>
    %11 = tpu.matmul %9, %10, %cst_10 {dimension_numbers = #tpu.dot_dimension_numbers<[1], [0], [0], [1], [0, 0, 1, 1], [], []>} : vector<4x2xf32>, vector<2x32xf32>, vector<4x32xf32> -> vector<4x32xf32>
    %12 = vector.extract_strided_slice %11 {offsets = [0, 0], sizes = [2, 32], strides = [1, 1]} : vector<4x32xf32> to vector<2x32xf32>
    %13 = vector.extract_strided_slice %11 {offsets = [2, 0], sizes = [2, 32], strides = [1, 1]} : vector<4x32xf32> to vector<2x32xf32>
    %14 = arith.addf %12, %13 : vector<2x32xf32>
    %15 = arith.negf %14 : vector<2x32xf32>
    %16 = math.exp %15 : vector<2x32xf32>
    %cst_11 = arith.constant 1.000000e+00 : f32
    %17 = vector.broadcast %cst_11 : f32 to vector<2x32xf32>
    %18 = arith.addf %17, %16 : vector<2x32xf32>
    %19 = arith.divf %17, %18 : vector<2x32xf32>
    %20 = vector.shape_cast %19 : vector<2x32xf32> to vector<2x32x1xf32>
    %21 = vector.broadcast %20 : vector<2x32x1xf32> to vector<2x32x16xf32>
    %22 = arith.mulf %0, %21 : vector<2x32x16xf32>
    %c0_12 = arith.constant 0 : index
    %c0_13 = arith.constant 0 : index
    %c0_14 = arith.constant 0 : index
    %23 = vector.load %arg4[%c0_12, %c0_13, %c0_14] : memref<2x32x16xf32, #tpu.memory_space<vmem>>, vector<2x32x16xf32>
    tpu.vector_store %arg4[%c0_12, %c0_13, %c0_14], %22 {strides = array<i32>} : memref<2x32x16xf32, #tpu.memory_space<vmem>>, vector<2x32x16xf32>,
    return
  }
  func.func @transform_0(%arg0: i32) -> (i32, i32, i32) {
    %c0_i32 = arith.constant 0 : i32
    %c0_i32_0 = arith.constant 0 : i32
    %c0_i32_1 = arith.constant 0 : i32
    return %arg0, %c0_i32, %c0_i32_0 : i32, i32, i32
  }
  func.func @transform_1(%arg0: i32) -> (i32, i32) {
    %c0_i32 = arith.constant 0 : i32
    %c0_i32_0 = arith.constant 0 : i32
    %c0_i32_1 = arith.constant 0 : i32
    return %c0_i32, %c0_i32_0 : i32, i32
  }
  func.func @transform_2(%arg0: i32) -> (i32, i32) {
    %c0_i32 = arith.constant 0 : i32
    %c0_i32_0 = arith.constant 0 : i32
    %c0_i32_1 = arith.constant 0 : i32
    return %c0_i32, %c0_i32_0 : i32, i32
  }
  func.func @transform_3(%arg0: i32) -> (i32, i32, i32) {
    %c0_i32 = arith.constant 0 : i32
    %c0_i32_0 = arith.constant 0 : i32
    %c0_i32_1 = arith.constant 0 : i32
    return %arg0, %c0_i32, %c0_i32_0 : i32, i32, i32
  }
}

</mosaic_0001>

<bundles_post_ra>
// kernel: tpu_custom_call.1
= control target key start
LH: loop header
LB: loop body
LE: loop exit
PB: predicated region body
PF: predicated region fallthrough
CT: control target
= control target key end

     0   :  { %vm22_vm0 = vcmask 130048   ;;  %v452_v27 = vmov 0.0|0.0   ;;  %vm453_vm1 = vmmov 0   ;;  %v454_v31 = vmov 0.0   ;;  %s622_s0 = inlined_call_operand.vmem [shape: f32[2,32,16], index: 0, kind: input, shape index: {}]   ;;  %s623_s1 = inlined_call_operand.vmem [shape: f32[32,2], index: 1, kind: input, shape index: {}]   ;;  %s624_s2 = inlined_call_operand.vmem [shape: f32[2,32], index: 2, kind: input, shape index: {}]   ;;  %s625_s3 = inlined_call_operand.vmem [shape: f32[2,32,16], index: 3, kind: output, shape index: {}]  }
   0x1   :  { %v478_v0 = vld [vmem:[%s622_s0 + $0x20] sm:$0xff]  ;;  %v488_v2 = vld [vmem:[%s622_s0 + $0x28] sm:$0xff]  ;;  %v506_v8 = vld [vmem:[%s622_s0 + $0x30] sm:$0xff]  ;;  %439 = vmatprep.subr.bf16.mxu0 %v452_v27  ;;  %431 = vmatprep.mubr.msk.f32.mxu0 %vm453_vm1, %v454_v31  ;;  %v87_v36 = vlaneseq  ;;  %vm98_vm2 = vcmask 130112   ;;  %vm105_vm3 = vcmask 195712   ;;  %vm112_vm4 = vcmask 261312  }
   0x2   :  { %v483_v1 = vld [vmem:[%s622_s0] sm:$0xff]  ;;  %v35_v3 = vsel %vm22_vm0, %v478_v0, 0.0  ;;  %v497_v5 = vld [vmem:[%s622_s0 + $0x8] sm:$0xff]  ;;  %v38_v6 = vsel %vm22_vm0, %v488_v2, 0.0  ;;  %v511_v9 = vld [vmem:[%s622_s0 + $0x10] sm:$0xff]  ;;  %v41_v10 = vsel %vm22_vm0, %v506_v8, 0.0  ;;  %434 = vmatprep.subr.mxu1 %v454_v31  ;;  %436 = vmatprep.mubr.msk.f32.mxu1 %vm453_vm1, %v454_v31 }
   0x3   :  { %v23_v4 = vsel %vm22_vm0, %v483_v1, 0.0  ;;  %36 = vadd.xlane.f32.xlu1 %v35_v3  ;;  %v26_v7 = vsel %vm22_vm0, %v497_v5, 0.0  ;;  %v29_v11 = vsel %vm22_vm0, %v511_v9, 0.0  ;;  %v520_v12 = vld [vmem:[%s622_s0 + $0x38] sm:$0xff]  ;;  %v58_v16 = vsel %vm22_vm0, %v497_v5, -inf  ;;  %v187_v24 = vld [vmem:[%s623_s1] sm:$0xff] }
   0x4   :  { %24 = vadd.xlane.f32.xlu0 %v23_v4  ;;  %v525_v13 = vld [vmem:[%s622_s0 + $0x18] sm:$0xff]  ;;  %v44_v14 = vsel %vm22_vm0, %v520_v12, 0.0  ;;  %v55_v17 = vsel %vm22_vm0, %v483_v1, -inf  ;;  %v70_v18 = vsel %vm22_vm0, %v488_v2, -inf  ;;  %v67_v19 = vsel %vm22_vm0, %v478_v0, -inf  ;;  %v188_v25 = vld [vmem:[%s623_s1 + $0x8] sm:$0xff] }
   0x5   :  { %v32_v15 = vsel %vm22_vm0, %v525_v13, 0.0  ;;  %v73_v20 = vsel %vm22_vm0, %v506_v8, -inf  ;;  %v61_v21 = vsel %vm22_vm0, %v511_v9, -inf  ;;  %v76_v22 = vsel %vm22_vm0, %v520_v12, -inf  ;;  %v189_v28 = vld [vmem:[%s623_s1 + $0x10] sm:$0xff]  ;;  %v190_v29 = vld [vmem:[%s623_s1 + $0x18] sm:$0xff] }
   0x6   :  { %v64_v23 = vsel %vm22_vm0, %v525_v13, -inf  ;;  %v440_v26 = vpack.c.bf16 %v188_v25, %v187_v24  ;;  %v443_v30 = vpack.c.bf16 %v190_v29, %v189_v28  ;;  %v88_v39 = vand.u32 127, %v87_v36 }
   0x7   :  { %39 = vadd.xlane.f32.xlu1 %v38_v6  ;;  %v559_v42 = vshrl.u32 %v87_v36, 7  ;;  %vm133_vm5 = vcmask 1041409   ;;  %vm182_vm6 = vcmask 1043459   ;;  %vm185_vm7 = vcmask 1041408  }
   0x8   :  { %27 = vadd.xlane.f32.xlu0 %v26_v7  ;;  %441 = vmatpush3.bf16.msra.mxu0 %v440_v26  ;;  %v93_v43 = vadd.s32 4294967288, %v88_v39  ;;  %v100_v44 = vadd.s32 4294967280, %v88_v39  ;;  %v107_v45 = vadd.s32 4294967272, %v88_v39  ;;  %vm191_vm8 = vcmask 261120  }
   0x9   :  { %442 = vmatprep.subr.bf16.mxu0 %v452_v27  ;;  %v91_v48 = vsub.s32 %v88_v39, %v559_v42  ;;  %vm267_vm9 = vcmask 15360  }
   0xa   :  { %v96_v49 = vsub.s32 %v93_v43, %v559_v42  ;;  %v103_v52 = vsub.s32 %v100_v44, %v559_v42  ;;  %v110_v55 = vsub.s32 %v107_v45, %v559_v42 }
   0xb   :  { %42 = vadd.xlane.f32.xlu1 %v41_v10 }
   0xc   :  { %30 = vadd.xlane.f32.xlu0 %v29_v11  ;;  %444 = vmatpush3.bf16.msra.mxu0 %v443_v30 }
   0xf   :  { %45 = vadd.xlane.f32.xlu1 %v44_v14 }
  0x10   :  { %33 = vadd.xlane.f32.xlu0 %v32_v15 }
  0x13   :  { %59 = vmax.xlane.f32.xlu1 %v58_v16 }
  0x14   :  { %56 = vmax.xlane.f32.xlu0 %v55_v17 }
  0x17   :  { %71 = vmax.xlane.f32.xlu1 %v70_v18 }
  0x18   :  { %68 = vmax.xlane.f32.xlu0 %v67_v19 }
  0x1b   :  { %74 = vmax.xlane.f32.xlu1 %v73_v20 }
  0x1c   :  { %62 = vmax.xlane.f32.xlu0 %v61_v21 }
  0x1f   :  { %77 = vmax.xlane.f32.xlu1 %v76_v22 }
  0x20   :  { %65 = vmax.xlane.f32.xlu0 %v64_v23 }
  0x90   :  { %v37_v32 = vpop.xlane.xlu1 %36 }
  0x91   :  { %v25_v33 = vpop.xlane.xlu0 %24  ;;  %v51_v56 = vmul.f32 0.0625, %v37_v32 }
  0x92   :  { %v47_v57 = vmul.f32 0.0625, %v25_v33 }
  0x93   :  { %v117_v6 = vrot.slane %v51_v56, %v91_v48  ;;  %v375_v56 = vsub.s32 1, %v559_v42 }
  0x94   :  { %v40_v34 = vpop.xlane.xlu1 %39  ;;  %v92_v7 = vrot.slane %v47_v57, %v91_v48 }
  0x95   :  { %v28_v35 = vpop.xlane.xlu0 %27  ;;  %v52_v50 = vmul.f32 0.0625, %v40_v34 }
  0x96   :  { %v48_v51 = vmul.f32 0.0625, %v28_v35 }
  0x97   :  { %v121_v62 = vrot.slane %v52_v50, %v96_v49 }
  0x98   :  { %v43_v37 = vpop.xlane.xlu1 %42  ;;  %v97_v63 = vrot.slane %v48_v51, %v96_v49 }
  0x99   :  { %v31_v38 = vpop.xlane.xlu0 %30  ;;  %v53_v53 = vmul.f32 0.0625, %v43_v37  ;;  %v122_v20 = vsel %vm98_vm2, %v121_v62, %v117_v6 }
  0x9a   :  { %v49_v54 = vmul.f32 0.0625, %v31_v38  ;;  %v99_v21 = vsel %vm98_vm2, %v97_v63, %v92_v7 }
  0x9b   :  { %v126_v3 = vrot.slane %v53_v53, %v103_v52  ;;  %v356_v53 = vsub.s32 0, %v559_v42 }
  0x9c   :  { %v46_v40 = vpop.xlane.xlu1 %45  ;;  %v104_v4 = vrot.slane %v49_v54, %v103_v52 }
  0x9d   :  { %v34_v41 = vpop.xlane.xlu0 %33  ;;  %v54_v58 = vmul.f32 0.0625, %v46_v40  ;;  %v127_v24 = vsel %vm105_vm3, %v126_v3, %v122_v20 }
  0x9e   :  { %v50_v59 = vmul.f32 0.0625, %v34_v41  ;;  %v106_v25 = vsel %vm105_vm3, %v104_v4, %v99_v21  ;;  %v266_v41 = vld [vmem:[%s624_s2] sm:$0x3] }
  0x9f   :  { %v131_v10 = vrot.slane %v54_v58, %v110_v55  ;;  %435 = vmatpush3.msk.msra.mxu1 %vm185_vm7, %v266_v41 }
  0xa0   :  { %v60_v46 = vpop.xlane.xlu1 %59  ;;  %v111_v11 = vrot.slane %v50_v59, %v110_v55 }
  0xa1   :  { %v57_v47 = vpop.xlane.xlu0 %56  ;;  %v151_v16 = vrot.slane %v60_v46, %v96_v49  ;;  %v132_v26 = vsel %vm112_vm4, %v131_v10, %v127_v24 }
  0xa2   :  { %v147_v17 = vrot.slane %v57_v47, %v91_v48  ;;  %v113_v27 = vsel %vm112_vm4, %v111_v11, %v106_v25 }
  0xa3   :  { %v134_v38 = vsel %vm133_vm5, %v132_v26, %v113_v27 }
  0xa4   :  { %v72_v60 = vpop.xlane.xlu1 %71  ;;  %v152_v30 = vsel %vm98_vm2, %v151_v16, %v147_v17 }
  0xa5   :  { %v69_v61 = vpop.xlane.xlu0 %68  ;;  %v170_v18 = vrot.slane %v72_v60, %v96_v49 }
  0xa6   :  { %v166_v19 = vrot.slane %v69_v61, %v91_v48 }
  0xa8   :  { %v75_v14 = vpop.xlane.xlu1 %74  ;;  %v171_v31 = vsel %vm98_vm2, %v170_v18, %v166_v19 }
  0xa9   :  { %v63_v15 = vpop.xlane.xlu0 %62  ;;  %v175_v22 = vrot.slane %v75_v14, %v103_v52 }
  0xaa   :  { %v156_v23 = vrot.slane %v63_v15, %v103_v52 }
  0xab   :  { %v176_v34 = vsel %vm105_vm3, %v175_v22, %v171_v31 }
  0xac   :  { %v78_v28 = vpop.xlane.xlu1 %77  ;;  %v157_v35 = vsel %vm105_vm3, %v156_v23, %v152_v30 }
  0xad   :  { %v66_v29 = vpop.xlane.xlu0 %65  ;;  %v180_v32 = vrot.slane %v78_v28, %v110_v55 }
  0xae   :  { %v161_v33 = vrot.slane %v66_v29, %v110_v55 }
  0xaf   :  { %v181_v36 = vsel %vm112_vm4, %v180_v32, %v176_v34 }
  0xb0   :  { %v162_v37 = vsel %vm112_vm4, %v161_v33, %v157_v35 }
  0xb1   :  { %v183_v39 = vsel %vm182_vm6, %v181_v36, %v162_v37 }
  0xb2   :  { %v186_v40 = vsel %vm185_vm7, %v134_v38, %v183_v39 }
  0xb3   :  { %432 = vmatmul.mubr.msk.f32.vlgmr.msra.gmra.mrb[0].mxu0 %vm191_vm8, %v186_v40 }
 0x186   :  { %v261_v43 = vpop.f32.mrb[0].mxu0 }
 0x187   :  { %v265_v44 = vmax.f32 %v261_v43, 0.0  ;;  %v433_v45 = vpop.f32.mrb[1].mxu0 }
 0x189   :  { %437 = vmatmul.mubr.msk.f32.vlgmr.msra.gmra.mrb[0].mxu1 %vm267_vm9, %v265_v44 }
 0x25c   :  { %v340_v46 = vpop.f32.mrb[0].mxu1 }
 0x25d   :  { %v345_v47 = vrot.slane %v340_v46, 2  ;;  %v438_v48 = vpop.f32.mrb[1].mxu1 }
 0x25f   :  { %v347_v49 = vadd.f32 %v345_v47, %v340_v46 }
 0x261   :  { %v415_v50 = vmul.f32 -1.442695, %v347_v49 }
 0x263   :  { %448 = vpow2.f32 %v415_v50 }
 0x26d   :  { %v449_v51 = vpop.eup %448 }
 0x26e   :  { %v351_v52 = vadd.f32 1.0, %v449_v51 }
 0x270   :  { %450 = vrcp.f32 %v351_v52 }
 0x27a   :  { %v451_v54 = vpop.eup %450 }
 0x27b   :  { %v357_v55 = vrot.slane %v451_v54, %v356_v53  ;;  %v376_v57 = vrot.slane %v451_v54, %v375_v56 }
 0x27d   :  { %363 = vbcast.lane.b32.xlu1 %v357_v55, 264  ;;  %359 = vbcast.lane.b32.xlu0 %v357_v55, 256 }
 0x281   :  { %367 = vbcast.lane.b32.xlu1 %v357_v55, 272  ;;  %378 = vbcast.lane.b32.xlu0 %v376_v57, 256 }
 0x285   :  { %371 = vbcast.lane.b32.xlu1 %v357_v55, 280  ;;  %386 = vbcast.lane.b32.xlu0 %v376_v57, 272 }
 0x289   :  { %382 = vbcast.lane.b32.xlu1 %v376_v57, 264 }
 0x28d   :  { %390 = vbcast.lane.b32.xlu1 %v376_v57, 280 }
 0x2ef   :  { %v364_v58 = vpop.permute.xlu1 %363  ;;  %v360_v59 = vpop.permute.xlu0 %359 }
 0x2f0   :  { %v393_v60 = vmul.f32 %v364_v58, %v497_v5  ;;  %v392_v61 = vmul.f32 %v360_v59, %v483_v1 }
 0x2f2   :  { %401 = vst.msk [vmem:[%s625_s3 + $0x8] sm:$0xff] %vm22_vm0, %v393_v60  ;;  %400 = vst.msk [vmem:[%s625_s3] sm:$0xff] %vm22_vm0, %v392_v61 }
 0x2f3   :  { %v368_v42 = vpop.permute.xlu1 %367  ;;  %v379_v62 = vpop.permute.xlu0 %378 }
 0x2f4   :  { %v394_v63 = vmul.f32 %v368_v42, %v511_v9  ;;  %v396_v3 = vmul.f32 %v379_v62, %v478_v0 }
 0x2f6   :  { %402 = vst.msk [vmem:[%s625_s3 + $0x10] sm:$0xff] %vm22_vm0, %v394_v63  ;;  %404 = vst.msk [vmem:[%s625_s3 + $0x20] sm:$0xff] %vm22_vm0, %v396_v3 }
 0x2f7   :  { %v372_v1 = vpop.permute.xlu1 %371  ;;  %v387_v5 = vpop.permute.xlu0 %386 }
 0x2f8   :  { %v395_v4 = vmul.f32 %v372_v1, %v525_v13  ;;  %v398_v6 = vmul.f32 %v387_v5, %v506_v8 }
 0x2fa   :  { %403 = vst.msk [vmem:[%s625_s3 + $0x18] sm:$0xff] %vm22_vm0, %v395_v4  ;;  %406 = vst.msk [vmem:[%s625_s3 + $0x30] sm:$0xff] %vm22_vm0, %v398_v6 }
 0x2fb   :  { %v383_v0 = vpop.permute.xlu1 %382 }
 0x2fc   :  { %v397_v9 = vmul.f32 %v383_v0, %v488_v2 }
 0x2fe   :  { %405 = vst.msk [vmem:[%s625_s3 + $0x28] sm:$0xff] %vm22_vm0, %v397_v9 }
 0x2ff   :  { %v391_v13 = vpop.permute.xlu1 %390 }
 0x300   :  { %v399_v8 = vmul.f32 %v391_v13, %v520_v12 }
 0x302   :  { %407 = vst.msk [vmem:[%s625_s3 + $0x38] sm:$0xff] %vm22_vm0, %v399_v8 }

</bundles_post_ra>
